<compile_context>
chip_gen: v6e
topology: v6e:2x2x1
jax: 0.10.0
libtpu: 0.0.40
codegen_flags: <defaults>
</compile_context>

<pallas_src>
import jax
import jax.numpy as jnp
from jax.experimental import pallas as pl
from jax.experimental.pallas import tpu as pltpu

_LANE = 128


def _round_up(x, m):
    return (x + m - 1) // m * m


def _chan_norm_kernel(x_ref, g_ref, b_ref, o_ref, *, eps):
    # x_ref / o_ref: (C, THW)   g_ref / b_ref: (C, 1)
    x = x_ref[...].astype(jnp.float32)

    mean = jnp.mean(x, axis=0, keepdims=True)            # (1, THW)
    xc = x - mean                                        # (C, THW)
    var = jnp.mean(xc * xc, axis=0, keepdims=True)       # biased (unbiased=False)
    inv = 1.0 / (jnp.sqrt(var) + eps)                    # one divide per lane column

    g = g_ref[...].astype(jnp.float32)                   # (C, 1) -> broadcasts over lanes
    b = b_ref[...].astype(jnp.float32)                   # (C, 1)

    # Matches torch exactly: (x - mean) / (std + eps) * g + b
    o_ref[...] = (xc * inv * g + b).astype(o_ref.dtype)


def chan_norm(x, g, b, eps=1e-5, max_lane_tile=1024):
    """x: (N, C, H, W); g, b: (1, C, 1, 1) as in the torch module."""
    N, C, H, W = x.shape
    HW = H * W

    # ---- lane (HW) tile selection --------------------------------------------
    # Multiple of 128, capped by `max_lane_tile` and by a conservative VMEM
    # budget (2x double-buffered input + 2x output + f32 temps) that is safe on
    # every TPU generation (v5e 16 MiB scoped default, v7x 64 MiB physical).
    elem = x.dtype.itemsize
    per_lane_bytes = C * (4 * elem + 4 * 4)              # in/out dbl-buffers + f32 temps
    budget = 8 << 20
    cap = max(_LANE, (budget // max(per_lane_bytes, 1)) // _LANE * _LANE)
    thw = min(_round_up(HW, _LANE), _round_up(max_lane_tile, _LANE), cap)
    hw_pad = _round_up(HW, thw)

    x_flat = x.reshape(N, C, HW)
    if hw_pad != HW:
        x_flat = jnp.pad(x_flat, ((0, 0), (0, 0), (0, hw_pad - HW)))
    g2 = g.reshape(C, 1)
    b2 = b.reshape(C, 1)

    grid = (N, hw_pad // thw)

    # Explicit VMEM limit sized from the chosen blocks, with headroom.
    vmem_limit = int(min(max(thw * per_lane_bytes + (2 << 20), 4 << 20), 48 << 20))

    kernel = lambda xr, gr, br, orf: _chan_norm_kernel(xr, gr, br, orf, eps=eps)

    out_flat = pl.pallas_call(
        kernel,
        out_shape=jax.ShapeDtypeStruct((N, C, hw_pad), x.dtype),
        grid_spec=pltpu.PrefetchScalarGridSpec(
            num_scalar_prefetch=0,
            grid=grid,
            in_specs=[
                pl.BlockSpec((pl.Squeezed(), C, thw), lambda n, h: (n, 0, h)),
                pl.BlockSpec((C, 1), lambda n, h: (0, 0)),
                pl.BlockSpec((C, 1), lambda n, h: (0, 0)),
            ],
            out_specs=pl.BlockSpec((pl.Squeezed(), C, thw), lambda n, h: (n, 0, h)),
        ),
        compiler_params=pltpu.CompilerParams(
            dimension_semantics=("parallel", "parallel"),
            vmem_limit_bytes=vmem_limit,
        ),
    )(x_flat, g2, b2)

    if hw_pad != HW:
        out_flat = out_flat[:, :, :HW]
    return out_flat.reshape(N, C, H, W)


def chan_norm_ref(x, g, b, eps=1e-5):
    """Pure-JAX mirror of the torch forward."""
    xf = x.astype(jnp.float32)
    mean = jnp.mean(xf, axis=1, keepdims=True)
    var = jnp.mean((xf - mean) ** 2, axis=1, keepdims=True)   # unbiased=False
    std = jnp.sqrt(var)
    return ((xf - mean) / (std + eps) * g + b).astype(x.dtype)


if __name__ == "__main__":
    key = jax.random.PRNGKey(0)
    k1, k2, k3, k4 = jax.random.split(key, 4)

    # Case 1: module-default params (ones / zeros), HW a multiple of 128.
    N, C, H, W = 2, 4, 16, 16
    x = jax.random.normal(k1, (N, C, H, W), dtype=jnp.float32)
    g = jnp.ones((1, C, 1, 1), dtype=jnp.float32)
    b = jnp.zeros((1, C, 1, 1), dtype=jnp.float32)

    out = jax.block_until_ready(chan_norm(x, g, b))
    ref = chan_norm_ref(x, g, b)
    assert out.shape == (N, C, H, W)
    assert jnp.allclose(out, ref, atol=1e-5, rtol=1e-5), "case 1 mismatch vs reference"

    # Case 2: non-trivial affine params + ragged HW (exercises the lane padding path).
    N2, C2, H2, W2 = 1, 6, 10, 10
    x2 = jax.random.normal(k2, (N2, C2, H2, W2), dtype=jnp.float32)
    g2 = jax.random.normal(k3, (1, C2, 1, 1), dtype=jnp.float32)
    b2 = jax.random.normal(k4, (1, C2, 1, 1), dtype=jnp.float32)

    out2 = jax.block_until_ready(chan_norm(x2, g2, b2))
    ref2 = chan_norm_ref(x2, g2, b2)
    assert out2.shape == (N2, C2, H2, W2)
    assert jnp.allclose(out2, ref2, atol=1e-5, rtol=1e-5), "case 2 mismatch vs reference"

    print("KERNEL_OK")
</pallas_src>

<mosaic_0001>
module attributes {stable_mosaic.version = 11 : i64} {
  func.func @_lambda_(%arg0: i32, %arg1: i32, %arg2: memref<1x4x256xf32, #tpu.memory_space<vmem>>, %arg3: memref<4x1xf32, #tpu.memory_space<vmem>>, %arg4: memref<4x1xf32, #tpu.memory_space<vmem>>, %arg5: memref<1x4x256xf32, #tpu.memory_space<vmem>>) attributes {dimension_semantics = [#tpu.dimension_semantics<parallel>, #tpu.dimension_semantics<parallel>], iteration_bounds = array<i64: 2, 1>, scalar_prefetch = 0 : i64, scratch_operands = 0 : i64, tpu.core_type = #tpu.core_type<tc>, window_params = [{transform_indices = @transform_0, window_bounds = array<i64: 1, 4, 256>}, {pipeline_mode = #tpu.pipeline_mode<synchronous>, transform_indices = @transform_1, window_bounds = array<i64: 4, 1>}, {pipeline_mode = #tpu.pipeline_mode<synchronous>, transform_indices = @transform_2, window_bounds = array<i64: 4, 1>}, {transform_indices = @transform_3, window_bounds = array<i64: 1, 4, 256>}]} {
    %c0 = arith.constant 0 : index
    %c0_0 = arith.constant 0 : index
    %c0_1 = arith.constant 0 : index
    %0 = vector.load %arg2[%c0, %c0_0, %c0_1] : memref<1x4x256xf32, #tpu.memory_space<vmem>>, vector<1x4x256xf32>
    %1 = vector.shape_cast %0 : vector<1x4x256xf32> to vector<4x256xf32>
    %cst = arith.constant dense<0.000000e+00> : vector<256xf32>
    %2 = vector.multi_reduction <add>, %1, %cst [0] : vector<4x256xf32> to vector<256xf32>
    %3 = vector.shape_cast %2 : vector<256xf32> to vector<1x256xf32>
    %cst_2 = arith.constant 4.000000e+00 : f32
    %4 = vector.broadcast %cst_2 : f32 to vector<1x256xf32>
    %5 = arith.divf %3, %4 : vector<1x256xf32>
    %6 = vector.broadcast %5 : vector<1x256xf32> to vector<4x256xf32>
    %7 = arith.subf %1, %6 : vector<4x256xf32>
    %8 = arith.mulf %7, %7 : vector<4x256xf32>
    %cst_3 = arith.constant dense<0.000000e+00> : vector<256xf32>
    %9 = vector.multi_reduction <add>, %8, %cst_3 [0] : vector<4x256xf32> to vector<256xf32>
    %10 = vector.shape_cast %9 : vector<256xf32> to vector<1x256xf32>
    %cst_4 = arith.constant 4.000000e+00 : f32
    %11 = vector.broadcast %cst_4 : f32 to vector<1x256xf32>
    %12 = arith.divf %10, %11 : vector<1x256xf32>
    %13 = math.sqrt %12 : vector<1x256xf32>
    %cst_5 = arith.constant 9.99999974E-6 : f32
    %14 = vector.broadcast %cst_5 : f32 to vector<1x256xf32>
    %15 = arith.addf %13, %14 : vector<1x256xf32>
    %cst_6 = arith.constant 1.000000e+00 : f32
    %16 = vector.broadcast %cst_6 : f32 to vector<1x256xf32>
    %17 = arith.divf %16, %15 : vector<1x256xf32>
    %c0_7 = arith.constant 0 : index
    %c0_8 = arith.constant 0 : index
    %18 = vector.load %arg3[%c0_7, %c0_8] : memref<4x1xf32, #tpu.memory_space<vmem>>, vector<4x1xf32>
    %c0_9 = arith.constant 0 : index
    %c0_10 = arith.constant 0 : index
    %19 = vector.load %arg4[%c0_9, %c0_10] : memref<4x1xf32, #tpu.memory_space<vmem>>, vector<4x1xf32>
    %20 = vector.broadcast %17 : vector<1x256xf32> to vector<4x256xf32>
    %21 = arith.mulf %7, %20 : vector<4x256xf32>
    %22 = vector.broadcast %18 : vector<4x1xf32> to vector<4x256xf32>
    %23 = arith.mulf %21, %22 : vector<4x256xf32>
    %24 = vector.broadcast %19 : vector<4x1xf32> to vector<4x256xf32>
    %25 = arith.addf %23, %24 : vector<4x256xf32>
    %c0_11 = arith.constant 0 : index
    %c0_12 = arith.constant 0 : index
    %c0_13 = arith.constant 0 : index
    %26 = vector.load %arg5[%c0_11, %c0_12, %c0_13] : memref<1x4x256xf32, #tpu.memory_space<vmem>>, vector<1x4x256xf32>
    %27 = vector.shape_cast %26 : vector<1x4x256xf32> to vector<4x256xf32>
    %28 = vector.shape_cast %25 : vector<4x256xf32> to vector<1x4x256xf32>
    tpu.vector_store %arg5[%c0_11, %c0_12, %c0_13], %28 {strides = array<i32>} : memref<1x4x256xf32, #tpu.memory_space<vmem>>, vector<1x4x256xf32>,
    return
  }
  func.func @transform_0(%arg0: i32, %arg1: i32) -> (i32, i32, i32) {
    %c0_i32 = arith.constant 0 : i32
    %c0_i32_0 = arith.constant 0 : i32
    return %arg0, %c0_i32, %arg1 : i32, i32, i32
  }
  func.func @transform_1(%arg0: i32, %arg1: i32) -> (i32, i32) {
    %c0_i32 = arith.constant 0 : i32
    %c0_i32_0 = arith.constant 0 : i32
    %c0_i32_1 = arith.constant 0 : i32
    return %c0_i32, %c0_i32_0 : i32, i32
  }
  func.func @transform_2(%arg0: i32, %arg1: i32) -> (i32, i32) {
    %c0_i32 = arith.constant 0 : i32
    %c0_i32_0 = arith.constant 0 : i32
    %c0_i32_1 = arith.constant 0 : i32
    return %c0_i32, %c0_i32_0 : i32, i32
  }
  func.func @transform_3(%arg0: i32, %arg1: i32) -> (i32, i32, i32) {
    %c0_i32 = arith.constant 0 : i32
    %c0_i32_0 = arith.constant 0 : i32
    return %arg0, %c0_i32, %arg1 : i32, i32, i32
  }
}

</mosaic_0001>

<bundles_post_ra>
// kernel: tpu_custom_call.1
= control target key start
LH: loop header
LB: loop body
LE: loop exit
PB: predicated region body
PF: predicated region fallthrough
CT: control target
= control target key end

     0   :  { %8 = vsyncpa [#allocation3], 0  ;;  %s782_s0 = inlined_call_operand.hbm [shape: f32[2,4,256], index: 0, kind: input, shape index: {}]   ;;  %s783_s1 = inlined_call_operand.vmem [shape: f32[4,1], index: 1, kind: input, shape index: {}]   ;;  %s784_s2 = inlined_call_operand.vmem [shape: f32[4,1], index: 2, kind: input, shape index: {}]   ;;  %s785_s3 = inlined_call_operand.hbm [shape: f32[2,4,256], index: 3, kind: output, shape index: {}]  }
   0x1   :  { %10 = vsyncpa [#allocation3 + $0x1], 0 }
   0x2   :  { %11 = vsyncpa [#allocation4], 0 }
   0x3   :  { %13 = vsyncpa [#allocation4 + $0x1], 0  ;;  %s634_s12 = smov 0   ;;  %s636_s13 = smov 0  }
   0x4   :  { %s638_s14 = smov 0   ;;  %s640_s15 = smov 0  }
   0x5   :  { %s642_s16 = smov 0   ;;  %s644_s17 = smov 0  }
   0x6 LB: > { %s409_s18 = sadd.s32 4294967295, %s608_s17   ;;  %s410_s19 = sadd.s32 4294967294, %s608_s17   ;;  %s608_s17 = sphi %s644_s17, %s19_s17   ;;  %s604_s16 = sphi %s642_s16, %s797_s16   ;;  %s600_s15 = sphi %s640_s15, %s796_s15   ;;  %s596_s14 = sphi %s638_s14, %s795_s14   ;;  %s592_s13 = sphi %s636_s13, %s794_s13   ;;  %s588_s12 = sphi %s634_s12, %s793_s12  }
   0x7   : > { %s31_s20 = sadd.s32 1, %s604_s16  ;;  %s40_s21 = sadd.s32 1, %s596_s14 }
   0x8   : > { %p33_p0 = scmp.ge.s32.totalorder %s31_s20, 2  ;;  %p47_p1 = scmp.ne.s32.totalorder %s596_s14, %s592_s13 }
   0x9   : > { %p48_p2 = scmp.eq.s32.totalorder %s608_s17, 0  ;;  %p53_p3 = scmp.ne.s32.totalorder %s592_s13, %s588_s12 }
   0xa   : > { %s799_s20 = smov (%p33_p0, %s31_s20), 0  ;;  %p54_p5 = scmp.eq.s32.totalorder %s409_s18, 0 }
   0xb   : > { %p675_p4 = por %p48_p2, %p47_p1  ;;  %s35_s23 = ssub.s32 %s604_s16, %s799_s20 }
   0xc   : > { %p121_p6 = scmp.eq.s32.totalorder %s409_s18, 1  ;;  %p38_p7 = scmp.eq.s32.totalorder %s35_s23, 0 }
   0xd   : > { %p681_p8 = por %p54_p5, %p53_p3  ;;  %p127_p10 = scmp.eq.s32.totalorder %s410_s19, 1 }
   0xe   : > { %p685_p9 = por %p121_p6, %p47_p1  ;;  %p438_p13 = scmp.lt.s32.totalorder %s608_s17, 2 }
   0xf   : > { %s690_s26 = scalar_select %p38_p7, %s596_s14, %s40_s21  }
  0x10   : > { %p692_p11 = por %p127_p10, %p53_p3  ;;  %s153_s28 = sand.u32 1, %s596_s14  }
  0x11   : > { %s413_s29 = sshll.u32 %s153_s28, 3  ;;  %s424_s30 = sshll.u32 %s604_s16, 7 }
  0x12   : > { %s789_s27 = scalar_select %p692_p11, 1, 0 }
  0x13   : > { %s165_s6 = scalar_lea.hbm %s782_s0, %s424_s30  ;;  %s157_s7 = scalar_lea.vmem [#allocation2], %s413_s29 }
  0x14   : > { %s167_s8 = sshll.u32 %s157_s7, 4  ;;  %p705_p0 = pnand %p438_p13, %p675_p4  ;;  %s168_s8 = int_to_ptr.vmem [resolvable:$true] %s167_s8 }
  0x15   : > { %p416_p1 = scmp.ge.s32.totalorder %s608_s17, 1  ;;  %p172_p2 = scmp.lt.s32.totalorder %s608_s17, 3 }
  0x16   : > { %s154_s10 = scalar_lea.sflag [#allocation3], %s153_s28  ;;  %p502_p3 = pneg %p705_p0 }
  0x17   : > { %s513_s11 = scalar_lea.vmem %s168_s8, 128  ;;  %s610_s18 = smov [#allocation2]  }
  0x18   : > { %p514_p5 = scmp.ne.s32.totalorder %s168_s8, %s513_s11  ;;  %s518_s19 = sshll.u32 %s610_s18, 4  ;;  %s519_s19 = int_to_ptr.vmem [resolvable:$false] %s518_s19 }
  0x19   : > { %s520_s21 = scalar_lea.vmem %s519_s19, 256  ;;  %p521_p10 = scmp.lt.s32.totalorder %s168_s8, %s519_s19 }
  0x1a   : > { %p516_p6 = pnand %p514_p5, %p502_p3  ;;  %p522_p12 = scmp.lt.s32.totalorder %s520_s21, %s513_s11 }
  0x1c   : > { %p517_p7 = pneg %p516_p6  ;;  %p523_p4 = por %p522_p12, %p521_p10 }
  0x1e   : > { %p524_p13 = pnand %p523_p4, %p517_p7 }
  0x20   : > { %527 = shalt.err (!%p524_p13)
}
  0x21   : > { %433 = dma.hbm_to_vmem [thread:$0]  (!%p705_p0), %s165_s6, 128, %s168_s8, %s154_s10  }
  0x22   : > { %p173_p11 = pnand %p416_p1, %p172_p2 }
  0x23   : > { %s720_s22 = sand.u32 (!%p173_p11), 1, %s592_s13  }
  0x24   : > { %176 = sbr.rel (%p173_p11) target bundleno = 189 (0xbd), region = 32  ;;  %s417_s23 = sshll.u32 (!%p173_p11), %s720_s22, 3 }
  0x25   : > { %s179_s28 = scalar_lea.sflag (!%p173_p11), [#allocation3], %s720_s22  ;;  %s182_s29 = scalar_lea.vmem (!%p173_p11), [#allocation2], %s417_s23 }
  0x29   : > { %579 = dma.done.wait (%p681_p8), %s179_s28, 128  }
  0x2a   : > { %581 = vsyncadd (%p681_p8), %s179_s28, 4294967168  ;;  %v611_v0 = vmov 0   ;;  %vm211_vm0 = vcmask 1043456   ;;  %v274_v1 = vld [vmem:[%s783_s1] sm:$0xf]  ;;  %v288_v55 = vlaneseq  ;;  %s425_s24 = sshll.u32 %s600_s15, 7 }
  0x2b   : > { %490 = vset.pattern.permute.xlu0 %v611_v0  ;;  %v207_v2 = vld [vmem:[%s182_s29] sm:$0xff]  ;;  %v612_v53 = vmov 839922192   ;;  %s204_s7 = scalar_lea.vmem [#allocation5], %s417_s23  ;;  %s323_s11 = scalar_lea.hbm %s785_s3, %s425_s24 }
  0x2c   : > { %283 = vperm.xlu0 %490, %v274_v1   ;;  %v209_v3 = vcombine.high %v207_v2, %v207_v2  ;;  %v212_v4 = vsel %vm211_vm0, %v207_v2, 0.0  ;;  %v275_v5 = vld [vmem:[%s784_s2] sm:$0xf]  ;;  %v286_v54 = vunpack.c.l.s4 %v612_v53  ;;  %v289_v58 = vshrl.u32 %v288_v55, 7  ;;  %s325_s8 = sshll.u32 %s204_s7, 4  ;;  %s309_s18 = scalar_lea.sflag [#allocation4], %s720_s22  ;;  %s326_s8 = int_to_ptr.vmem [resolvable:$true] %s325_s8 }
  0x2d   : > { %v213_v6 = vrot.slane %v212_v4, 4  ;;  %s528_s19 = scalar_lea.vmem %s326_s8, 128  ;;  %s613_s21 = smov [#allocation5]  }
  0x2e   : > { %v219_v7 = vsel %vm211_vm0, %v209_v3, 0.0  ;;  %v287_v57 = vunpack.c.0.s8 %v286_v54  ;;  %p529_p8 = scmp.ne.s32.totalorder %s326_s8, %s528_s19  ;;  %s532_s15 = sshll.u32 %s613_s21, 4  ;;  %s533_s15 = int_to_ptr.vmem [resolvable:$false] %s532_s15 }
  0x2f   : > { %v214_v8 = vadd.f32 %v213_v6, %v212_v4  ;;  %v220_v9 = vrot.slane %v219_v7, 4  ;;  %s534_s23 = scalar_lea.vmem %s533_s15, 256  ;;  %p535_p0 = scmp.lt.s32.totalorder %s326_s8, %s533_s15 }
  0x30   : > { %296 = vperm.xlu0 %490, %v275_v5   ;;  %v290_v60 = vsub.s32 %v287_v57, %v289_v58  ;;  %p530_p11 = pnand %p529_p8, %p685_p9  ;;  %p536_p1 = scmp.lt.s32.totalorder %s534_s23, %s528_s19 }
  0x31   : > { %v221_v10 = vadd.f32 %v220_v9, %v219_v7  ;;  %v215_v11 = vrot.slane %v214_v8, 2 }
  0x32   : > { %p531_p12 = pneg %p530_p11  ;;  %p537_p2 = por %p536_p1, %p535_p0 }
  0x33   : > { %v222_v12 = vrot.slane %v221_v10, 2  ;;  %v216_v13 = vadd.f32 %v215_v11, %v214_v8 }
  0x34   : > { %p538_p3 = pnand %p537_p2, %p531_p12 }
  0x35   : > { %v223_v14 = vadd.f32 %v222_v12, %v221_v10  ;;  %v217_v15 = vrot.slane %v216_v13, 1 }
  0x37   : > { %v224_v16 = vrot.slane %v223_v14, 1  ;;  %v218_v17 = vadd.f32 %v217_v15, %v216_v13 }
  0x39   : > { %v225_v18 = vadd.f32 %v224_v16, %v223_v14  ;;  %v227_v19 = vmul.f32 0.25, %v218_v17 }
  0x3b   : > { %v228_v20 = vmul.f32 0.25, %v225_v18 }
  0x3d   : > { %v231_v21 = vcombine.low %v227_v19, %v228_v20 }
  0x3f   : > { %v233_v22 = vsub.f32 %v207_v2, %v231_v21 }
  0x41   : > { %v234_v23 = vmul.f32 %v233_v22, %v233_v22 }
  0x43   : > { %v236_v24 = vcombine.high %v234_v23, %v234_v23  ;;  %v238_v25 = vsel %vm211_vm0, %v234_v23, 0.0 }
  0x44   : > { %v239_v27 = vrot.slane %v238_v25, 4 }
  0x45   : > { %v245_v26 = vsel %vm211_vm0, %v236_v24, 0.0 }
  0x46   : > { %v246_v28 = vrot.slane %v245_v26, 4  ;;  %v240_v29 = vadd.f32 %v239_v27, %v238_v25 }
  0x48   : > { %v247_v30 = vadd.f32 %v246_v28, %v245_v26  ;;  %v241_v31 = vrot.slane %v240_v29, 2 }
  0x4a   : > { %v248_v32 = vrot.slane %v247_v30, 2  ;;  %v242_v33 = vadd.f32 %v241_v31, %v240_v29 }
  0x4c   : > { %v249_v34 = vadd.f32 %v248_v32, %v247_v30  ;;  %v243_v35 = vrot.slane %v242_v33, 1 }
  0x4e   : > { %v250_v36 = vrot.slane %v249_v34, 1  ;;  %v244_v37 = vadd.f32 %v243_v35, %v242_v33 }
  0x50   : > { %v251_v38 = vadd.f32 %v250_v36, %v249_v34  ;;  %v252_v39 = vmul.f32 0.25, %v244_v37 }
  0x52   : > { %v253_v40 = vmul.f32 0.25, %v251_v38  ;;  %492 = vrsqrt.f32 %v252_v39  ;;  %vm256_vm1 = vcmp.eq.f32.partialorder %v252_v39, inf  ;;  %v259_v45 = vand.u32 2147483648, %v252_v39 }
  0x53   : > { %vm258_vm3 = vcmp.eq.f32.partialorder %v252_v39, 0.0 }
  0x54   : > { %494 = vrsqrt.f32 %v253_v40  ;;  %vm263_vm2 = vcmp.eq.f32.partialorder %v253_v40, inf  ;;  %v266_v47 = vand.u32 2147483648, %v253_v40  ;;  %vm265_vm4 = vcmp.eq.f32.partialorder %v253_v40, 0.0 }
  0x5f   : > { %v493_v41 = vpop.eup %492 }
  0x60   : > { %v255_v43 = vmul.f32 %v493_v41, %v252_v39 }
  0x61   : > { %v495_v42 = vpop.eup %494 }
  0x62   : > { %v262_v44 = vmul.f32 %v495_v42, %v253_v40  ;;  %v257_v46 = vsel %vm256_vm1, %v252_v39, %v255_v43 }
  0x63   : > { %v260_v49 = vsel %vm258_vm3, %v259_v45, %v257_v46 }
  0x64   : > { %v264_v48 = vsel %vm263_vm2, %v253_v40, %v262_v44  ;;  %v268_v51 = vadd.f32 1e-05, %v260_v49 }
  0x65   : > { %v267_v50 = vsel %vm265_vm4, %v266_v47, %v264_v48 }
  0x66   : > { %v269_v52 = vadd.f32 1e-05, %v267_v50  ;;  %496 = vrcp.f32 %v268_v51 }
  0x68   : > { %498 = vrcp.f32 %v269_v52 }
  0x73   : > { %v497_v56 = vpop.eup %496 }
  0x75   : > { %v499_v59 = vpop.eup %498 }
  0x76   : > { %v278_v61 = vcombine.low %v497_v56, %v499_v59 }
  0x78   : > { %v280_v63 = vmul.f32 %v278_v61, %v233_v22 }
  0xa7   : > { %v284_v62 = vpop.permute.xlu0 %283 }
  0xa8   : > { %v291_v0 = vrot.slane %v284_v62, %v290_v60 }
  0xaa   : > { %v293_v2 = vmul.f32 %v291_v0, %v280_v63 }
  0xab   : > { %v297_v1 = vpop.permute.xlu0 %296 }
  0xac   : > { %v304_v3 = vrot.slane %v297_v1, %v290_v60 }
  0xae   : > { %v306_v4 = vadd.f32 %v304_v3, %v293_v2 }
  0xb0   : > { %307 = vst [vmem:[%s204_s7] sm:$0xff] %v306_v4 }
  0xb1   : > { %541 = shalt.err (!%p538_p3)
}
  0xb2   : > { %s542_s28 = scalar_lea.hbm %s323_s11, 128  ;;  %s546_s30 = scalar_lea.hbm %s785_s3, 256 }
  0xb3   : > { %p543_p5 = scmp.ne.s32.totalorder %s323_s11, %s542_s28  ;;  %p547_p10 = scmp.lt.s32.totalorder %s323_s11, %s785_s3 }
  0xb4   : > { %p548_p4 = scmp.lt.s32.totalorder %s546_s30, %s542_s28 }
  0xb5   : > { %p544_p6 = pnand %p543_p5, %p685_p9 }
  0xb6   : > { %p549_p13 = por %p548_p4, %p547_p10 }
  0xb7   : > { %p545_p7 = pneg %p544_p6 }
  0xb9   : > { %p550_p8 = pnand %p549_p13, %p545_p7 }
  0xbb   : > { %553 = shalt.err (!%p550_p8)
}
  0xbc   : > { %428 = dma.vmem_to_hbm [thread:$0]  (%p685_p9), %s326_s8, 128, %s323_s11, %s309_s18  }
  0xbd PF: > { %s337_s6 = sand.u32 1, %s588_s12   ;;  %p791_p11 = scmp.ne.s32.totalorder %s789_s27, 0 }
  0xbe   : > { %p792_p12 = scmp.ge.s32.totalorder %s608_s17, 2  ;;  %s338_s24 = scalar_lea.sflag [#allocation4], %s337_s6 }
  0xc0   : > { %p435_p0 = pnand %p792_p12, %p791_p11 }
  0xc2   : > { %p436_p1 = pneg %p435_p0 }
  0xc4   : > { %583 = dma.done.wait (%p436_p1), %s338_s24, 128  }
  0xc5   : > { %585 = vsyncadd (%p436_p1), %s338_s24, 4294967168  ;;  %s19_s17 = sadd.s32 1, %s608_s17   ;;  %s793_s12 = smov %s592_s13 }
  0xc6   : > { %p16_p2 = scmp.ge.s32.totalorder %s19_s17, 4   ;;  %s794_s13 = smov %s596_s14 }
  0xc7   : > { %s795_s14 = smov %s690_s26  ;;  %s796_s15 = smov %s604_s16 }
  0xc8   : > { %s797_s16 = smov %s799_s20  ;;  %18 = sbr.rel (!%p16_p2) target bundleno = 6 (0x6), region = 77 }
  0xcd   :  { %343 = vsyncpa [#allocation3], 1 }
  0xce   :  { %345 = vsyncpa [#allocation3 + $0x1], 1 }
  0xcf   :  { %346 = vsyncpa [#allocation4], 1 }
  0xd0   :  { %348 = vsyncpa [#allocation4 + $0x1], 1 }

</bundles_post_ra>
